<compile_context>
chip_gen: v7x
topology: tpu7x:2x2x1
jax: 0.10.0
libtpu: 0.0.40
codegen_flags: <defaults>
</compile_context>

<pallas_src>
import functools

import jax
import jax.numpy as jnp
from jax.experimental import pallas as pl
from jax.experimental.pallas import tpu as pltpu


def _round_up(x: int, m: int) -> int:
    return ((x + m - 1) // m) * m


def _pad2(x, rows: int, cols: int):
    r, c = x.shape
    if r == rows and c == cols:
        return x
    return jnp.pad(x, ((0, rows - r), (0, cols - c)))


def _sage_layer_kernel(adj_ref, x_src_ref, x_dst_ref,
                       w_self_ref, w_neigh_ref, b_ref, o_ref,
                       acc_ref, deg_ref, *, apply_relu: bool):
    k = pl.program_id(1)

    @pl.when(k == 0)
    def _init():
        acc_ref[...] = jnp.zeros_like(acc_ref)
        deg_ref[...] = jnp.zeros_like(deg_ref)

    a = adj_ref[...]                                   # [tD, tS] bf16 {0,1}
    # neighbor-sum accumulation on the MXU, f32 accumulator
    acc_ref[...] += jnp.dot(a, x_src_ref[...],
                            preferred_element_type=jnp.float32)
    # in-degree accumulation (XLU lane reduce; exact since values are 0/1 in f32)
    deg_ref[...] += jnp.sum(a.astype(jnp.float32), axis=-1, keepdims=True)

    @pl.when(k == pl.num_programs(1) - 1)
    def _finalize():
        deg = deg_ref[...]                             # [tD, 1]
        inv = jnp.where(deg > 0, 1.0 / jnp.maximum(deg, 1.0), 0.0)
        h_neigh = (acc_ref[...] * inv).astype(w_neigh_ref.dtype)   # [tD, Fin]
        out = (jnp.dot(x_dst_ref[...], w_self_ref[...],
                       preferred_element_type=jnp.float32)
               + jnp.dot(h_neigh, w_neigh_ref[...],
                         preferred_element_type=jnp.float32)
               + b_ref[...])
        if apply_relu:
            out = jnp.maximum(out, 0.0)
        o_ref[...] = out.astype(o_ref.dtype)


def sage_conv_mean(adj, x_src, x_dst, w_self, w_neigh, bias, *,
                   apply_relu=False, out_dtype=jnp.float32,
                   tile_d=512, tile_s=2048):
    """One DGL-style SAGEConv (mean) layer, fully fused in a tiled Pallas kernel.

    adj     : [D, S] dense {0,1} adjacency of the MFG (dst x src), raw / unnormalized.
    x_src   : [S, Fin] source-node features.
    x_dst   : [D, Fin] destination-node features (prefix of x_src in DGL MFGs).
    w_self  : [Fin, Fout], w_neigh: [Fin, Fout], bias: [Fout].
    """
    D, S = adj.shape
    Fin = x_src.shape[1]
    Fout = w_self.shape[1]

    # --- tile sizes / TPU-friendly padding -------------------------------
    tD = min(tile_d, _round_up(D, 8))          # sublane-aligned dst tile
    tS = min(tile_s, _round_up(S, 128))        # lane-aligned reduction tile
    D_pad = _round_up(D, tD)
    S_pad = _round_up(S, tS)
    Fin_pad = _round_up(Fin, 128)
    Fout_pad = _round_up(Fout, 128)            # lane-dense output slab

    # bf16 operands (MXU-native), zero padding keeps the math exact.
    adj_p = _pad2(adj, D_pad, S_pad).astype(jnp.bfloat16)
    xs_p = _pad2(x_src, S_pad, Fin_pad).astype(jnp.bfloat16)
    xd_p = _pad2(x_dst, D_pad, Fin_pad).astype(jnp.bfloat16)
    ws_p = _pad2(w_self, Fin_pad, Fout_pad).astype(jnp.bfloat16)
    wn_p = _pad2(w_neigh, Fin_pad, Fout_pad).astype(jnp.bfloat16)
    b_p = _pad2(bias.reshape(1, Fout).astype(jnp.float32), 1, Fout_pad)

    grid = (D_pad // tD, S_pad // tS)          # (parallel dst rows, reduction)
    kernel = functools.partial(_sage_layer_kernel, apply_relu=apply_relu)

    out_p = pl.pallas_call(
        kernel,
        out_shape=jax.ShapeDtypeStruct((D_pad, Fout_pad), out_dtype),
        grid_spec=pltpu.PrefetchScalarGridSpec(
            num_scalar_prefetch=0,
            grid=grid,
            in_specs=[
                pl.BlockSpec((tD, tS), lambda i, k: (i, k)),            # adj tile
                pl.BlockSpec((tS, Fin_pad), lambda i, k: (k, 0)),       # x_src tile
                pl.BlockSpec((tD, Fin_pad), lambda i, k: (i, 0)),       # x_dst tile (resident over k)
                pl.BlockSpec((Fin_pad, Fout_pad), lambda i, k: (0, 0)),  # w_self (resident)
                pl.BlockSpec((Fin_pad, Fout_pad), lambda i, k: (0, 0)),  # w_neigh (resident)
                pl.BlockSpec((1, Fout_pad), lambda i, k: (0, 0)),        # bias (resident)
            ],
            out_specs=pl.BlockSpec((tD, Fout_pad), lambda i, k: (i, 0)),
            scratch_shapes=[
                pltpu.VMEM((tD, Fin_pad), jnp.float32),   # A @ X accumulator
                pltpu.VMEM((tD, 1), jnp.float32),         # in-degree accumulator
            ],
        ),
        compiler_params=pltpu.CompilerParams(
            dimension_semantics=("parallel", "arbitrary"),
            vmem_limit_bytes=48 * 1024 * 1024,            # v7x-safe (<64 MiB physical)
        ),
    )(adj_p, xs_p, xd_p, ws_p, wn_p, b_p)

    return out_p[:D, :Fout]


def model_forward(params, adj1, adj2, x, num_dst1, num_dst2):
    """Equivalent of Model.forward(mfgs, x) with dense MFG adjacencies."""
    # layer 1: h_dst = x[:num_dst1]; ReLU fused in-kernel; bf16 intermediate
    h_dst = x[:num_dst1]
    h = sage_conv_mean(adj1, x, h_dst,
                       params["w_self1"], params["w_neigh1"], params["b1"],
                       apply_relu=True, out_dtype=jnp.bfloat16)
    # layer 2: h_dst = h[:num_dst2]; raw logits in f32
    h_dst2 = h[:num_dst2]
    logits = sage_conv_mean(adj2, h, h_dst2,
                            params["w_self2"], params["w_neigh2"], params["b2"],
                            apply_relu=False, out_dtype=jnp.float32)
    return logits


def model_forward_ref(params, adj1, adj2, x, num_dst1, num_dst2):
    """Pure-JAX f32 reference (DGL SAGEConv mean semantics)."""
    def layer(adj, xs, xd, ws, wn, b, relu):
        deg = adj.sum(axis=1, keepdims=True)
        inv = jnp.where(deg > 0, 1.0 / jnp.maximum(deg, 1.0), 0.0)
        h_neigh = (adj @ xs) * inv
        out = xd @ ws + h_neigh @ wn + b
        return jnp.maximum(out, 0.0) if relu else out

    h = layer(adj1, x, x[:num_dst1],
              params["w_self1"], params["w_neigh1"], params["b1"], True)
    return layer(adj2, h, h[:num_dst2],
                 params["w_self2"], params["w_neigh2"], params["b2"], False)


def init_params(key, in_feats, h_feats, num_classes):
    ks = jax.random.split(key, 4)
    scale1 = 1.0 / jnp.sqrt(in_feats)
    scale2 = 1.0 / jnp.sqrt(h_feats)
    return {
        # stored as [in, out] (transpose of torch nn.Linear weight)
        "w_self1":  scale1 * jax.random.normal(ks[0], (in_feats, h_feats), jnp.float32),
        "w_neigh1": scale1 * jax.random.normal(ks[1], (in_feats, h_feats), jnp.float32),
        "b1":       jnp.zeros((h_feats,), jnp.float32),
        "w_self2":  scale2 * jax.random.normal(ks[2], (h_feats, num_classes), jnp.float32),
        "w_neigh2": scale2 * jax.random.normal(ks[3], (h_feats, num_classes), jnp.float32),
        "b2":       jnp.zeros((num_classes,), jnp.float32),
    }


if __name__ == "__main__":
    # Small synthetic MFG stack (same structure as DGL neighbor-sampled blocks):
    #   block 1: num_src1 = 64 src nodes -> num_dst1 = 32 dst nodes
    #   block 2: num_src2 = 32 (== num_dst1) -> num_dst2 = 16 dst nodes
    # TODO(synk): DGL's neighbor sampling / MFG construction has no Pallas
    # equivalent; the blocks are represented as dense {0,1} adjacencies here.
    in_feats, h_feats, num_classes = 32, 32, 8
    num_src1, num_dst1, num_dst2 = 64, 32, 16

    key = jax.random.PRNGKey(0)
    k_x, k_a1, k_a2, k_p = jax.random.split(key, 4)

    x = jax.random.normal(k_x, (num_src1, in_feats), jnp.float32)
    adj1 = (jax.random.uniform(k_a1, (num_dst1, num_src1)) < 0.2).astype(jnp.float32)
    adj2 = (jax.random.uniform(k_a2, (num_dst2, num_dst1)) < 0.3).astype(jnp.float32)

    params = init_params(k_p, in_feats, h_feats, num_classes)

    logits = model_forward(params, adj1, adj2, x, num_dst1, num_dst2)
    logits = jax.block_until_ready(logits)

    assert logits.shape == (num_dst2, num_classes), logits.shape
    assert jnp.all(jnp.isfinite(logits))

    # loose check against pure-JAX f32 reference (bf16 operands -> ~1e-2 error)
    ref = model_forward_ref(params, adj1, adj2, x, num_dst1, num_dst2)
    max_err = float(jnp.max(jnp.abs(logits - ref)))
    assert max_err < 0.2, f"max abs error vs f32 reference too large: {max_err}"

    print("KERNEL_OK")
</pallas_src>

<mosaic_0001>
module attributes {stable_mosaic.version = 11 : i64} {
  func.func @_sage_layer_kernel(%arg0: i32, %arg1: i32, %arg2: memref<32x128xbf16, #tpu.memory_space<vmem>>, %arg3: memref<128x128xbf16, #tpu.memory_space<vmem>>, %arg4: memref<32x128xbf16, #tpu.memory_space<vmem>>, %arg5: memref<128x128xbf16, #tpu.memory_space<vmem>>, %arg6: memref<128x128xbf16, #tpu.memory_space<vmem>>, %arg7: memref<1x128xf32, #tpu.memory_space<vmem>>, %arg8: memref<32x128xbf16, #tpu.memory_space<vmem>>, %arg9: memref<32x128xf32, #tpu.memory_space<vmem>>, %arg10: memref<32x1xf32, #tpu.memory_space<vmem>>) attributes {dimension_semantics = [#tpu.dimension_semantics<parallel>, #tpu.dimension_semantics<arbitrary>], iteration_bounds = array<i64: 1, 1>, scalar_prefetch = 0 : i64, scratch_operands = 2 : i64, tpu.core_type = #tpu.core_type<tc>, window_params = [{transform_indices = @transform_0, window_bounds = array<i64: 32, 128>}, {transform_indices = @transform_1, window_bounds = array<i64: 128, 128>}, {transform_indices = @transform_2, window_bounds = array<i64: 32, 128>}, {pipeline_mode = #tpu.pipeline_mode<synchronous>, transform_indices = @transform_3, window_bounds = array<i64: 128, 128>}, {pipeline_mode = #tpu.pipeline_mode<synchronous>, transform_indices = @transform_4, window_bounds = array<i64: 128, 128>}, {pipeline_mode = #tpu.pipeline_mode<synchronous>, transform_indices = @transform_5, window_bounds = array<i64: 1, 128>}, {transform_indices = @transform_6, window_bounds = array<i64: 32, 128>}]} {
    %c0_i32 = arith.constant 0 : i32
    %0 = arith.cmpi eq, %arg1, %c0_i32 : i32
    %1 = arith.extui %0 : i1 to i32
    %c0_i32_0 = arith.constant 0 : i32
    %2 = arith.cmpi ne, %1, %c0_i32_0 : i32
    scf.if %2 {
      %cst_15 = arith.constant 0.000000e+00 : f32
      %18 = vector.broadcast %cst_15 : f32 to vector<32x128xf32>
      %c0_16 = arith.constant 0 : index
      %c0_17 = arith.constant 0 : index
      %19 = vector.load %arg9[%c0_16, %c0_17] : memref<32x128xf32, #tpu.memory_space<vmem>>, vector<32x128xf32>
      tpu.vector_store %arg9[%c0_16, %c0_17], %18 {strides = array<i32>} : memref<32x128xf32, #tpu.memory_space<vmem>>, vector<32x128xf32>,
      %cst_18 = arith.constant 0.000000e+00 : f32
      %20 = vector.broadcast %cst_18 : f32 to vector<32x1xf32>
      %c0_19 = arith.constant 0 : index
      %c0_20 = arith.constant 0 : index
      %21 = vector.load %arg10[%c0_19, %c0_20] : memref<32x1xf32, #tpu.memory_space<vmem>>, vector<32x1xf32>
      tpu.vector_store %arg10[%c0_19, %c0_20], %20 {strides = array<i32>} : memref<32x1xf32, #tpu.memory_space<vmem>>, vector<32x1xf32>,
    } else {
    }
    %c0 = arith.constant 0 : index
    %c0_1 = arith.constant 0 : index
    %3 = vector.load %arg2[%c0, %c0_1] : memref<32x128xbf16, #tpu.memory_space<vmem>>, vector<32x128xbf16>
    %c0_2 = arith.constant 0 : index
    %c0_3 = arith.constant 0 : index
    %4 = vector.load %arg9[%c0_2, %c0_3] : memref<32x128xf32, #tpu.memory_space<vmem>>, vector<32x128xf32>
    %c0_4 = arith.constant 0 : index
    %c0_5 = arith.constant 0 : index
    %5 = vector.load %arg3[%c0_4, %c0_5] : memref<128x128xbf16, #tpu.memory_space<vmem>>, vector<128x128xbf16>
    %cst = arith.constant dense<0.000000e+00> : vector<32x128xf32>
    %6 = tpu.matmul %3, %5, %cst {dimension_numbers = #tpu.dot_dimension_numbers<[1], [0], [0], [1], [0, 0, 1, 1], [], []>} : vector<32x128xbf16>, vector<128x128xbf16>, vector<32x128xf32> -> vector<32x128xf32>
    %7 = arith.addf %4, %6 : vector<32x128xf32>
    %c0_6 = arith.constant 0 : index
    %c0_7 = arith.constant 0 : index
    %8 = vector.load %arg9[%c0_6, %c0_7] : memref<32x128xf32, #tpu.memory_space<vmem>>, vector<32x128xf32>
    tpu.vector_store %arg9[%c0_6, %c0_7], %7 {strides = array<i32>} : memref<32x128xf32, #tpu.memory_space<vmem>>, vector<32x128xf32>,
    %c0_8 = arith.constant 0 : index
    %c0_9 = arith.constant 0 : index
    %9 = vector.load %arg10[%c0_8, %c0_9] : memref<32x1xf32, #tpu.memory_space<vmem>>, vector<32x1xf32>
    %10 = arith.extf %3 : vector<32x128xbf16> to vector<32x128xf32>
    %cst_10 = arith.constant dense<0.000000e+00> : vector<32xf32>
    %11 = vector.multi_reduction <add>, %10, %cst_10 [1] : vector<32x128xf32> to vector<32xf32>
    %12 = vector.shape_cast %11 : vector<32xf32> to vector<32x1xf32>
    %13 = arith.addf %9, %12 : vector<32x1xf32>
    %c0_11 = arith.constant 0 : index
    %c0_12 = arith.constant 0 : index
    %14 = vector.load %arg10[%c0_11, %c0_12] : memref<32x1xf32, #tpu.memory_space<vmem>>, vector<32x1xf32>
    tpu.vector_store %arg10[%c0_11, %c0_12], %13 {strides = array<i32>} : memref<32x1xf32, #tpu.memory_space<vmem>>, vector<32x1xf32>,
    %c0_i32_13 = arith.constant 0 : i32
    %15 = arith.cmpi eq, %arg1, %c0_i32_13 : i32
    %16 = arith.extui %15 : i1 to i32
    %c0_i32_14 = arith.constant 0 : i32
    %17 = arith.cmpi ne, %16, %c0_i32_14 : i32
    scf.if %17 {
      %c0_15 = arith.constant 0 : index
      %c0_16 = arith.constant 0 : index
      %18 = vector.load %arg10[%c0_15, %c0_16] : memref<32x1xf32, #tpu.memory_space<vmem>>, vector<32x1xf32>
      %cst_17 = arith.constant 0.000000e+00 : f32
      %19 = vector.broadcast %cst_17 : f32 to vector<32x1xf32>
      %20 = arith.cmpf ogt, %18, %19 : vector<32x1xf32>
      %cst_18 = arith.constant 1.000000e+00 : f32
      %21 = vector.broadcast %cst_18 : f32 to vector<32x1xf32>
      %22 = arith.maximumf %18, %21 : vector<32x1xf32>
      %cst_19 = arith.constant 1.000000e+00 : f32
      %23 = vector.broadcast %cst_19 : f32 to vector<32x1xf32>
      %24 = arith.divf %23, %22 : vector<32x1xf32>
      %cst_20 = arith.constant 0.000000e+00 : f32
      %25 = vector.broadcast %cst_20 : f32 to vector<32x1xf32>
      %26 = arith.select %20, %24, %25 : vector<32x1xi1>, vector<32x1xf32>
      %c0_21 = arith.constant 0 : index
      %c0_22 = arith.constant 0 : index
      %27 = vector.load %arg9[%c0_21, %c0_22] : memref<32x128xf32, #tpu.memory_space<vmem>>, vector<32x128xf32>
      %28 = vector.broadcast %26 : vector<32x1xf32> to vector<32x128xf32>
      %29 = arith.mulf %27, %28 : vector<32x128xf32>
      %30 = arith.truncf %29 : vector<32x128xf32> to vector<32x128xbf16>
      %c0_23 = arith.constant 0 : index
      %c0_24 = arith.constant 0 : index
      %31 = vector.load %arg4[%c0_23, %c0_24] : memref<32x128xbf16, #tpu.memory_space<vmem>>, vector<32x128xbf16>
      %c0_25 = arith.constant 0 : index
      %c0_26 = arith.constant 0 : index
      %32 = vector.load %arg5[%c0_25, %c0_26] : memref<128x128xbf16, #tpu.memory_space<vmem>>, vector<128x128xbf16>
      %cst_27 = arith.constant dense<0.000000e+00> : vector<32x128xf32>
      %33 = tpu.matmul %31, %32, %cst_27 {dimension_numbers = #tpu.dot_dimension_numbers<[1], [0], [0], [1], [0, 0, 1, 1], [], []>} : vector<32x128xbf16>, vector<128x128xbf16>, vector<32x128xf32> -> vector<32x128xf32>
      %c0_28 = arith.constant 0 : index
      %c0_29 = arith.constant 0 : index
      %34 = vector.load %arg6[%c0_28, %c0_29] : memref<128x128xbf16, #tpu.memory_space<vmem>>, vector<128x128xbf16>
      %cst_30 = arith.constant dense<0.000000e+00> : vector<32x128xf32>
      %35 = tpu.matmul %30, %34, %cst_30 {dimension_numbers = #tpu.dot_dimension_numbers<[1], [0], [0], [1], [0, 0, 1, 1], [], []>} : vector<32x128xbf16>, vector<128x128xbf16>, vector<32x128xf32> -> vector<32x128xf32>
      %36 = arith.addf %33, %35 : vector<32x128xf32>
      %c0_31 = arith.constant 0 : index
      %c0_32 = arith.constant 0 : index
      %37 = vector.load %arg7[%c0_31, %c0_32] : memref<1x128xf32, #tpu.memory_space<vmem>>, vector<1x128xf32>
      %38 = vector.broadcast %37 : vector<1x128xf32> to vector<32x128xf32>
      %39 = arith.addf %36, %38 : vector<32x128xf32>
      %cst_33 = arith.constant 0.000000e+00 : f32
      %40 = vector.broadcast %cst_33 : f32 to vector<32x128xf32>
      %41 = arith.maximumf %39, %40 : vector<32x128xf32>
      %42 = arith.truncf %41 : vector<32x128xf32> to vector<32x128xbf16>
      %c0_34 = arith.constant 0 : index
      %c0_35 = arith.constant 0 : index
      %43 = vector.load %arg8[%c0_34, %c0_35] : memref<32x128xbf16, #tpu.memory_space<vmem>>, vector<32x128xbf16>
      tpu.vector_store %arg8[%c0_34, %c0_35], %42 {strides = array<i32>} : memref<32x128xbf16, #tpu.memory_space<vmem>>, vector<32x128xbf16>,
    } else {
    }
    return
  }
  func.func @transform_0(%arg0: i32, %arg1: i32) -> (i32, i32) {
    %c0_i32 = arith.constant 0 : i32
    return %arg0, %arg1 : i32, i32
  }
  func.func @transform_1(%arg0: i32, %arg1: i32) -> (i32, i32) {
    %c0_i32 = arith.constant 0 : i32
    %c0_i32_0 = arith.constant 0 : i32
    return %arg1, %c0_i32 : i32, i32
  }
  func.func @transform_2(%arg0: i32, %arg1: i32) -> (i32, i32) {
    %c0_i32 = arith.constant 0 : i32
    %c0_i32_0 = arith.constant 0 : i32
    return %arg0, %c0_i32 : i32, i32
  }
  func.func @transform_3(%arg0: i32, %arg1: i32) -> (i32, i32) {
    %c0_i32 = arith.constant 0 : i32
    %c0_i32_0 = arith.constant 0 : i32
    %c0_i32_1 = arith.constant 0 : i32
    return %c0_i32, %c0_i32_0 : i32, i32
  }
  func.func @transform_4(%arg0: i32, %arg1: i32) -> (i32, i32) {
    %c0_i32 = arith.constant 0 : i32
    %c0_i32_0 = arith.constant 0 : i32
    %c0_i32_1 = arith.constant 0 : i32
    return %c0_i32, %c0_i32_0 : i32, i32
  }
  func.func @transform_5(%arg0: i32, %arg1: i32) -> (i32, i32) {
    %c0_i32 = arith.constant 0 : i32
    %c0_i32_0 = arith.constant 0 : i32
    %c0_i32_1 = arith.constant 0 : i32
    return %c0_i32, %c0_i32_0 : i32, i32
  }
  func.func @transform_6(%arg0: i32, %arg1: i32) -> (i32, i32) {
    %c0_i32 = arith.constant 0 : i32
    %c0_i32_0 = arith.constant 0 : i32
    return %arg0, %c0_i32 : i32, i32
  }
}

</mosaic_0001>

<bundles_post_ra>
// kernel: tpu_custom_call.1
= control target key start
LH: loop header
LB: loop body
LE: loop exit
PB: predicated region body
PF: predicated region fallthrough
CT: control target
= control target key end

     0   :  { %11 = vsyncpa [#allocation5], 0  ;;  %s1117_s0 = inlined_call_operand.hbm [shape: bf16[32,128], index: 0, kind: input, shape index: {}]   ;;  %s1118_s1 = inlined_call_operand.hbm [shape: bf16[128,128], index: 1, kind: input, shape index: {}]   ;;  %s1119_s2 = inlined_call_operand.hbm [shape: bf16[32,128], index: 2, kind: input, shape index: {}]   ;;  %s1120_s3 = inlined_call_operand.hbm [shape: bf16[128,128], index: 3, kind: input, shape index: {}]   ;;  %s1121_s4 = inlined_call_operand.hbm [shape: bf16[128,128], index: 4, kind: input, shape index: {}]   ;;  %s1122_s5 = inlined_call_operand.vmem [shape: f32[1,128], index: 5, kind: input, shape index: {}]   ;;  %s1123_s6 = inlined_call_operand.hbm [shape: bf16[32,128], index: 6, kind: output, shape index: {}]  }
   0x1   :  { %12 = vsyncpa [#allocation8], 0 }
   0x2   :  { %13 = vsyncpa [#allocation11], 0 }
   0x3   :  { %14 = vsyncpa [#allocation6], 0  ;;  %s957_s21 = smov [#allocation7]   ;;  %s958_s23 = smov [#allocation10]  }
   0x4   :  { %s32_s22 = sshll.u32 %s957_s21, 4  ;;  %s56_s24 = sshll.u32 %s958_s23, 4  ;;  %s33_s22 = int_to_ptr.vmem [resolvable:$true] %s32_s22  ;;  %s1002_s24 = int_to_ptr.vmem [resolvable:$true] %s56_s24 }
   0x5   :  { %s817_s27 = scalar_lea.hbm %s1118_s1, 1024 }
   0x6   :  { %p818_p0 = scmp.ne.s32.totalorder %s1118_s1, %s817_s27  ;;  %p821_p1 = scmp.lt.u32.totalorder %s817_s27, %s1118_s1 }
   0x8   :  { %p823_p2 = pnand %p821_p1, %p818_p0 }
   0xa   :  { %826 = shalt.err (!%p823_p2)
}
   0xb   :  { %s827_s8 = scalar_lea.vmem %s33_s22, 1024  ;;  %p832_p4 = scmp.lt.s32.totalorder %s33_s22, %s33_s22 }
   0xc   :  { %p828_p3 = scmp.ne.s32.totalorder %s33_s22, %s827_s8  ;;  %p833_p5 = scmp.lt.s32.totalorder %s827_s8, %s827_s8 }
   0xe   :  { %p834_p6 = por %p833_p5, %p832_p4 }
  0x10   :  { %p835_p7 = pnand %p834_p6, %p828_p3 }
  0x12   :  { %838 = shalt.err (!%p835_p7)
}
  0x13   :  { %s959_s9 = smov 64   ;;  %s960_s10 = smov 4  }
  0x14   :  { %38 = dma.hbm_to_vmem [thread:$0]  %s1118_s1, 1024, %s33_s22, [#allocation8], %s959_s9, %s959_s9, %s960_s10  }
  0x15   :  { %s839_s15 = scalar_lea.hbm %s1120_s3, 1024 }
  0x16   :  { %p840_p8 = scmp.ne.s32.totalorder %s1120_s3, %s839_s15  ;;  %p843_p9 = scmp.lt.u32.totalorder %s839_s15, %s1120_s3 }
  0x18   :  { %p845_p10 = pnand %p843_p9, %p840_p8 }
  0x1a   :  { %848 = shalt.err (!%p845_p10)
}
  0x1b   :  { %s849_s20 = scalar_lea.vmem %s1002_s24, 1024  ;;  %p854_p12 = scmp.lt.s32.totalorder %s1002_s24, %s1002_s24 }
  0x1c   :  { %p850_p11 = scmp.ne.s32.totalorder %s1002_s24, %s849_s20  ;;  %p855_p13 = scmp.lt.s32.totalorder %s849_s20, %s849_s20 }
  0x1e   :  { %p856_p0 = por %p855_p13, %p854_p12 }
  0x20   :  { %p857_p1 = pnand %p856_p0, %p850_p11 }
  0x22   :  { %860 = shalt.err (!%p857_p1)
}
  0x23   :  { %62 = dma.hbm_to_vmem [thread:$0]  %s1120_s3, 1024, %s1002_s24, [#allocation11], %s959_s9, %s959_s9, %s960_s10  }
  0x24   :  { %s961_s22 = smov [#allocation4]   ;;  %s962_s25 = smov [#allocation9]  }
  0x25   :  { %s20_s23 = sshll.u32 %s961_s22, 4  ;;  %s44_s26 = sshll.u32 %s962_s25, 4  ;;  %s21_s23 = int_to_ptr.vmem [resolvable:$true] %s20_s23  ;;  %s1039_s26 = int_to_ptr.vmem [resolvable:$true] %s44_s26 }
  0x26   :  { %s861_s29 = scalar_lea.hbm %s1117_s0, 256 }
  0x27   :  { %p862_p2 = scmp.ne.s32.totalorder %s1117_s0, %s861_s29  ;;  %p865_p3 = scmp.lt.u32.totalorder %s861_s29, %s1117_s0 }
  0x29   :  { %p867_p4 = pnand %p865_p3, %p862_p2 }
  0x2b   :  { %870 = shalt.err (!%p867_p4)
}
  0x2c   :  { %s871_s3 = scalar_lea.vmem %s21_s23, 256  ;;  %p876_p6 = scmp.lt.s32.totalorder %s21_s23, %s21_s23 }
  0x2d   :  { %p872_p5 = scmp.ne.s32.totalorder %s21_s23, %s871_s3  ;;  %p877_p7 = scmp.lt.s32.totalorder %s871_s3, %s871_s3 }
  0x2f   :  { %p878_p8 = por %p877_p7, %p876_p6 }
  0x31   :  { %p879_p9 = pnand %p878_p8, %p872_p5 }
  0x33   :  { %882 = shalt.err (!%p879_p9)
}
  0x34   :  { %26 = dma.hbm_to_vmem [thread:$0]  %s1117_s0, 256, %s21_s23, [#allocation5], %s959_s9, %s959_s9, %s960_s10  }
  0x35   :  { %s883_s15 = scalar_lea.hbm %s1119_s2, 256 }
  0x36   :  { %p884_p10 = scmp.ne.s32.totalorder %s1119_s2, %s883_s15  ;;  %p887_p11 = scmp.lt.u32.totalorder %s883_s15, %s1119_s2 }
  0x38   :  { %p889_p12 = pnand %p887_p11, %p884_p10 }
  0x3a   :  { %892 = shalt.err (!%p889_p12)
}
  0x3b   :  { %s893_s20 = scalar_lea.vmem %s1039_s26, 256  ;;  %p898_p0 = scmp.lt.s32.totalorder %s1039_s26, %s1039_s26 }
  0x3c   :  { %p894_p13 = scmp.ne.s32.totalorder %s1039_s26, %s893_s20  ;;  %p899_p1 = scmp.lt.s32.totalorder %s893_s20, %s893_s20 }
  0x3e   :  { %p900_p2 = por %p899_p1, %p898_p0 }
  0x40   :  { %p901_p3 = pnand %p900_p2, %p894_p13 }
  0x42   :  { %904 = shalt.err (!%p901_p3)
}
  0x43   :  { %50 = dma.hbm_to_vmem [thread:$0]  %s1119_s2, 256, %s1039_s26, [#allocation8], %s959_s9, %s959_s9, %s960_s10  }
  0x44   :  { %s963_s21 = smov [#allocation12]   ;;  %s905_s27 = scalar_lea.hbm %s1121_s4, 1024 }
  0x45   :  { %s68_s22 = sshll.u32 %s963_s21, 4  ;;  %p906_p4 = scmp.ne.s32.totalorder %s1121_s4, %s905_s27  ;;  %s69_s22 = int_to_ptr.vmem [resolvable:$true] %s68_s22 }
  0x46   :  { %p909_p5 = scmp.lt.u32.totalorder %s905_s27, %s1121_s4 }
  0x48   :  { %p911_p6 = pnand %p909_p5, %p906_p4 }
  0x4a   :  { %914 = shalt.err (!%p911_p6)
}
  0x4b   :  { %s915_s8 = scalar_lea.vmem %s69_s22, 1024  ;;  %p920_p8 = scmp.lt.s32.totalorder %s69_s22, %s69_s22 }
  0x4c   :  { %p916_p7 = scmp.ne.s32.totalorder %s69_s22, %s915_s8  ;;  %p921_p9 = scmp.lt.s32.totalorder %s915_s8, %s915_s8 }
  0x4e   :  { %p922_p10 = por %p921_p9, %p920_p8 }
  0x50   :  { %p923_p11 = pnand %p922_p10, %p916_p7 }
  0x52   :  { %926 = shalt.err (!%p923_p11)
}
  0x53   :  { %74 = dma.hbm_to_vmem [thread:$0]  %s1121_s4, 1024, %s69_s22, [#allocation11], %s959_s9, %s959_s9, %s960_s10  }
  0x54   :  { %949 = dma.done.wait [#allocation5], 256  }
  0x55   :  { %950 = vsyncadd [#allocation5], 4294967040 }
  0x56   :  { %951 = dma.done.wait [#allocation8], 1280  }
  0x57   :  { %952 = vsyncadd [#allocation8], 4294966016 }
  0x58   :  { %953 = dma.done.wait [#allocation11], 2048  }
  0x59   :  { %954 = vsyncadd [#allocation11], 4294965248  ;;  %vm101_vm0 = vcmask 7168   ;;  %v964_v0 = vmov 0.0   ;;  %v108_v1 = vld [vmem:[#allocation4 + $0x8] sm:$0xff]   ;;  %v106_v2 = vld [vmem:[#allocation4] sm:$0xff]  }
  0x5a   :  { %104 = vst.msk [vmem:[#allocation3 + $0x10] sm:$0xff] %vm101_vm0, %v964_v0  ;;  %102 = vst.msk [vmem:[#allocation3] sm:$0xff] %vm101_vm0, %v964_v0  ;;  %v253_v3 = vunpack.c.l.bf16 %v108_v1  ;;  %v251_v4 = vunpack.c.l.bf16 %v106_v2  ;;  %v780_v5 = vld [vmem:[#allocation7] sm:$0xff]   ;;  %v781_v6 = vld [vmem:[#allocation7 + $0x8] sm:$0xff]   ;;  %v254_v7 = vunpack.c.h.bf16 %v108_v1  ;;  %v252_v8 = vunpack.c.h.bf16 %v106_v2  ;;  %719 = vmatprep.mubr.bf16.mxu0 %v106_v2  ;;  %s966_s3 = smov [#allocation13]  }
  0x5b   :  { %103 = vst.msk [vmem:[#allocation3 + $0x8] sm:$0xff] %vm101_vm0, %v964_v0  ;;  %105 = vst.msk [vmem:[#allocation3 + $0x18] sm:$0xff] %vm101_vm0, %v964_v0  ;;  %703 = vmatprep.subr.bf16.mxu0 %v780_v5  ;;  %v782_v9 = vld [vmem:[#allocation7 + $0x10] sm:$0xff]   ;;  %v783_v10 = vld [vmem:[#allocation7 + $0x18] sm:$0xff]   ;;  %v965_v14 = vmov 0   ;;  %s611_s24 = sshll.u32 %s966_s3, 4  ;;  %s612_s24 = int_to_ptr.vmem [resolvable:$true] %s611_s24 }
  0x5c   :  { %259 = vadd.xlane.f32.xlu1 %v253_v3  ;;  %255 = vadd.xlane.f32.xlu0 %v251_v4  ;;  %v784_v11 = vld [vmem:[#allocation7 + $0x20] sm:$0xff]   ;;  %v785_v12 = vld [vmem:[#allocation7 + $0x28] sm:$0xff]   ;;  %v786_v13 = vld [vmem:[#allocation7 + $0x30] sm:$0xff]   ;;  %p932_p13 = scmp.lt.s32.totalorder %s612_s24, %s612_s24 }
  0x5d   :  { %704 = vmatpush3.bf16.msra.mxu0 %v780_v5  ;;  %777 = vset.pattern.permute.xlu0 %v965_v14  ;;  %v787_v15 = vld [vmem:[#allocation7 + $0x38] sm:$0xff]   ;;  %v789_v16 = vld [vmem:[#allocation12] sm:$0xff]   ;;  %v791_v18 = vld [vmem:[#allocation12 + $0x10] sm:$0xff]  }
  0x5e   :  { %705 = vmatprep.subr.bf16.mxu0 %v781_v6  ;;  %778 = vset.pattern.permute.xlu1 %v965_v14  ;;  %v790_v17 = vld [vmem:[#allocation12 + $0x8] sm:$0xff]   ;;  %v792_v19 = vld [vmem:[#allocation12 + $0x18] sm:$0xff]   ;;  %v793_v20 = vld [vmem:[#allocation12 + $0x20] sm:$0xff]  }
  0x5f   :  { %723 = vmatprep.subr.bf16.mxu1 %v789_v16  ;;  %v794_v43 = vld [vmem:[#allocation12 + $0x28] sm:$0xff]   ;;  %v795_v47 = vld [vmem:[#allocation12 + $0x30] sm:$0xff]   ;;  %v796_v50 = vld [vmem:[#allocation12 + $0x38] sm:$0xff]  }
  0x60   :  { %261 = vadd.xlane.f32.xlu1 %v254_v7  ;;  %257 = vadd.xlane.f32.xlu0 %v252_v8  ;;  %v797_v52 = vld [vmem:[#allocation10] sm:$0xff]   ;;  %v805_v2 = vld [vmem:[#allocation9] sm:$0xff]   ;;  %v798_v4 = vld [vmem:[#allocation10 + $0x8] sm:$0xff]  }
  0x61   :  { %706 = vmatpush3.bf16.msra.mxu0 %v781_v6  ;;  %724 = vmatpush3.bf16.msra.mxu1 %v789_v16  ;;  %v249_v21 = vld [vmem:[#allocation3 + $0x10] sm:$0xff]  ;;  %v247_v22 = vld [vmem:[#allocation3] sm:$0xff]  ;;  %v800_v6 = vld [vmem:[#allocation10 + $0x18] sm:$0xff]  }
  0x62   :  { %707 = vmatprep.subr.bf16.mxu0 %v782_v9  ;;  %725 = vmatprep.subr.bf16.mxu1 %v790_v17  ;;  %v250_v27 = vld [vmem:[#allocation3 + $0x18] sm:$0xff]  ;;  %v248_v28 = vld [vmem:[#allocation3 + $0x8] sm:$0xff]  ;;  %v799_v5 = vld [vmem:[#allocation10 + $0x10] sm:$0xff]  }
  0x63   :  { %v801_v7 = vld [vmem:[#allocation10 + $0x20] sm:$0xff]   ;;  %v802_v8 = vld [vmem:[#allocation10 + $0x28] sm:$0xff]  }
  0x65   :  { %708 = vmatpush3.bf16.msra.mxu0 %v782_v9  ;;  %726 = vmatpush3.bf16.msra.mxu1 %v790_v17  ;;  %v803_v9 = vld [vmem:[#allocation10 + $0x30] sm:$0xff]  }
  0x66   :  { %709 = vmatprep.subr.bf16.mxu0 %v783_v10  ;;  %727 = vmatprep.subr.bf16.mxu1 %v791_v18 }
  0x69   :  { %710 = vmatpush3.bf16.msra.mxu0 %v783_v10  ;;  %728 = vmatpush3.bf16.msra.mxu1 %v791_v18  ;;  %v804_v10 = vld [vmem:[#allocation10 + $0x38] sm:$0xff]  }
  0x6a   :  { %711 = vmatprep.subr.bf16.mxu0 %v784_v11  ;;  %729 = vmatprep.subr.bf16.mxu1 %v792_v19 }
  0x6d   :  { %712 = vmatpush3.bf16.msra.mxu0 %v784_v11  ;;  %730 = vmatpush3.bf16.msra.mxu1 %v792_v19  ;;  %v806_v11 = vld [vmem:[#allocation9 + $0x8] sm:$0xff]  }
  0x6e   :  { %713 = vmatprep.subr.bf16.mxu0 %v785_v12  ;;  %731 = vmatprep.subr.bf16.mxu1 %v793_v20 }
  0x71   :  { %714 = vmatpush3.bf16.msra.mxu0 %v785_v12  ;;  %732 = vmatpush3.bf16.msra.mxu1 %v793_v20  ;;  %v653_v12 = vld [vmem:[%s1122_s5] ss:$0 sm:$0xff]  ;;  %s927_s5 = scalar_lea.vmem %s612_s24, 256 }
  0x72   :  { %715 = vmatprep.subr.bf16.mxu0 %v786_v13  ;;  %733 = vmatprep.subr.bf16.mxu1 %v794_v43  ;;  %p928_p12 = scmp.ne.s32.totalorder %s612_s24, %s927_s5  ;;  %p933_p0 = scmp.lt.s32.totalorder %s927_s5, %s927_s5 }
  0x74   :  { %p934_p1 = por %p933_p0, %p932_p13 }
  0x75   :  { %716 = vmatpush3.bf16.msra.mxu0 %v786_v13  ;;  %734 = vmatpush3.bf16.msra.mxu1 %v794_v43 }
  0x76   :  { %717 = vmatprep.subr.bf16.mxu0 %v787_v15  ;;  %735 = vmatprep.subr.bf16.mxu1 %v795_v47  ;;  %p935_p2 = pnand %p934_p1, %p928_p12 }
  0x79   :  { %718 = vmatpush3.bf16.msra.mxu0 %v787_v15  ;;  %736 = vmatpush3.bf16.msra.mxu1 %v795_v47 }
  0x7a   :  { %737 = vmatprep.subr.bf16.mxu1 %v796_v50 }
  0x7c   :  { %720 = vmatmul.mubr.bf16.vlgmr.msra.gmra.mrb[0].mxu0 %v108_v1 }
  0x7d   :  { %738 = vmatpush3.bf16.msra.mxu1 %v796_v50 }
  0x7e   :  { %743 = vmatprep.subr.bf16.mxu1 %v797_v52 }
  0xe9   :  { %v260_v23 = vpop.xlane.xlu1 %259  ;;  %v256_v24 = vpop.xlane.xlu0 %255 }
  0xea   :  { %v265_v25 = vadd.f32 %v260_v23, %v249_v21  ;;  %v263_v26 = vadd.f32 %v256_v24, %v247_v22 }
  0xec   :  { %270 = vst.msk [vmem:[#allocation3 + $0x10] sm:$0xff] %vm101_vm0, %v265_v25  ;;  %268 = vst.msk [vmem:[#allocation3] sm:$0xff] %vm101_vm0, %v263_v26 }
  0xed   :  { %v262_v29 = vpop.xlane.xlu1 %261  ;;  %v258_v30 = vpop.xlane.xlu0 %257 }
  0xee   :  { %v266_v31 = vadd.f32 %v262_v29, %v250_v27  ;;  %v264_v32 = vadd.f32 %v258_v30, %v248_v28 }
  0xf0   :  { %271 = vst.msk [vmem:[#allocation3 + $0x18] sm:$0xff] %vm101_vm0, %v266_v31  ;;  %269 = vst.msk [vmem:[#allocation3 + $0x8] sm:$0xff] %vm101_vm0, %v264_v32 }
  0xf3   :  { %v275_v33 = vld [vmem:[#allocation3] sm:$0xff]  ;;  %v277_v35 = vld [vmem:[#allocation3 + $0x10] sm:$0xff] }
  0xf4   :  { %v283_v34 = vmax.f32 %v275_v33, 1.0  ;;  %v285_v38 = vmax.f32 %v277_v35, 1.0  ;;  %vm279_vm1 = vcmp.gt.f32.partialorder %v275_v33, 0.0  ;;  %vm281_vm3 = vcmp.gt.f32.partialorder %v277_v35, 0.0 }
  0xf6   :  { %809 = vrcp.f32 %v283_v34 }
  0xf7   :  { %v276_v36 = vld [vmem:[#allocation3 + $0x8] sm:$0xff]  ;;  %v278_v39 = vld [vmem:[#allocation3 + $0x18] sm:$0xff] }
  0xf8   :  { %v284_v37 = vmax.f32 %v276_v36, 1.0  ;;  %v286_v40 = vmax.f32 %v278_v39, 1.0  ;;  %vm280_vm2 = vcmp.gt.f32.partialorder %v276_v36, 0.0  ;;  %vm282_vm4 = vcmp.gt.f32.partialorder %v278_v39, 0.0 }
  0xfa   :  { %811 = vrcp.f32 %v284_v37 }
  0xfb   :  { %813 = vrcp.f32 %v285_v38 }
  0xfc   :  { %815 = vrcp.f32 %v286_v40 }
 0x100   :  { %v810_v41 = vpop.eup %809 }
 0x101   :  { %v295_v42 = vsel %vm279_vm1, %v810_v41, 0.0 }
 0x102   :  { %305 = vperm.xlu0 %777, %v295_v42  }
 0x104   :  { %v812_v44 = vpop.eup %811 }
 0x105   :  { %v296_v45 = vsel %vm280_vm2, %v812_v44, 0.0  ;;  %v814_v46 = vpop.eup %813 }
 0x106   :  { %310 = vperm.xlu1 %778, %v296_v45   ;;  %v297_v48 = vsel %vm281_vm3, %v814_v46, 0.0  ;;  %v816_v49 = vpop.eup %815 }
 0x107   :  { %v298_v51 = vsel %vm282_vm4, %v816_v49, 0.0 }
 0x10a   :  { %315 = vperm.xlu1 %778, %v297_v48  }
 0x10e   :  { %320 = vperm.xlu1 %778, %v298_v51  }
 0x14f   :  { %v721_v53 = vpop.f32.mrb[0].mxu0 }
 0x150   :  { %v224_v54 = vpop.f32.mrb[1].mxu0 }
 0x151   :  { %v722_v55 = vpop.f32.mrb[2].mxu0 }
 0x152   :  { %v227_v56 = vpop.f32.mrb[3].mxu0 }
 0x181   :  { %v306_v57 = vpop.permute.xlu0 %305 }
 0x182   :  { %v323_v59 = vmul.f32 %v306_v57, %v224_v54 }
 0x185   :  { %v311_v58 = vpop.permute.xlu1 %310 }
 0x186   :  { %v324_v60 = vmul.f32 %v311_v58, %v227_v56 }
 0x188   :  { %v327_v61 = vpack.c.bf16 %v324_v60, %v323_v59 }
 0x189   :  { %v316_v62 = vpop.permute.xlu1 %315 }
 0x18a   :  { %739 = vmatprep.mubr.bf16.mxu1 %v327_v61  ;;  %v325_v0 = vmul.f32 %v721_v53, %v316_v62 }
 0x18d   :  { %v321_v63 = vpop.permute.xlu1 %320 }
 0x18e   :  { %v326_v1 = vmul.f32 %v722_v55, %v321_v63 }
 0x190   :  { %v328_v3 = vpack.c.bf16 %v326_v1, %v325_v0 }
 0x192   :  { %740 = vmatmul.mubr.bf16.vlgmr.msra.gmra.mrb[0].mxu1 %v328_v3 }
 0x193   :  { %744 = vmatpush3.bf16.msra.mxu1 %v797_v52  ;;  %759 = vmatprep.mubr.bf16.mxu1 %v805_v2 }
 0x194   :  { %745 = vmatprep.subr.bf16.mxu1 %v798_v4 }
 0x197   :  { %746 = vmatpush3.bf16.msra.mxu1 %v798_v4 }
 0x198   :  { %747 = vmatprep.subr.bf16.mxu1 %v799_v5 }
 0x19b   :  { %748 = vmatpush3.bf16.msra.mxu1 %v799_v5 }
 0x19c   :  { %749 = vmatprep.subr.bf16.mxu1 %v800_v6 }
 0x19f   :  { %750 = vmatpush3.bf16.msra.mxu1 %v800_v6 }
 0x1a0   :  { %751 = vmatprep.subr.bf16.mxu1 %v801_v7 }
 0x1a3   :  { %752 = vmatpush3.bf16.msra.mxu1 %v801_v7 }
 0x1a4   :  { %753 = vmatprep.subr.bf16.mxu1 %v802_v8 }
 0x1a7   :  { %754 = vmatpush3.bf16.msra.mxu1 %v802_v8 }
 0x1a8   :  { %755 = vmatprep.subr.bf16.mxu1 %v803_v9 }
 0x1ab   :  { %756 = vmatpush3.bf16.msra.mxu1 %v803_v9 }
 0x1ac   :  { %757 = vmatprep.subr.bf16.mxu1 %v804_v10 }
 0x1af   :  { %758 = vmatpush3.bf16.msra.mxu1 %v804_v10 }
 0x1b2   :  { %760 = vmatmul.mubr.bf16.vlgmr.msra.gmra.mrb[0].mxu1 %v806_v11 }
 0x285   :  { %v761_v13 = vpop.f32.mrb[0].mxu1 }
 0x286   :  { %v580_v14 = vadd.f32 %v761_v13, %v653_v12  ;;  %v556_v15 = vpop.f32.mrb[1].mxu1 }
 0x287   :  { %v578_v16 = vadd.f32 %v653_v12, %v556_v15  ;;  %v762_v17 = vpop.f32.mrb[2].mxu1 }
 0x288   :  { %v581_v18 = vadd.f32 %v762_v17, %v653_v12  ;;  %v559_v19 = vpop.f32.mrb[3].mxu1  ;;  %v584_v21 = vmax.f32 %v580_v14, 0.0 }
 0x289   :  { %v579_v20 = vadd.f32 %v653_v12, %v559_v19  ;;  %v582_v23 = vmax.f32 %v578_v16, 0.0 }
 0x28a   :  { %v585_v22 = vmax.f32 %v581_v18, 0.0 }
 0x28b   :  { %v583_v24 = vmax.f32 %v579_v20, 0.0 }
 0x28c   :  { %v670_v25 = vpack.c.bf16 %v585_v22, %v584_v21 }
 0x28d   :  { %v665_v26 = vpack.c.bf16 %v583_v24, %v582_v23 }
 0x28e   :  { %672 = vst [vmem:[#allocation13 + $0x8] sm:$0xff] %v670_v25  }
 0x28f   :  { %666 = vst [vmem:[#allocation13] sm:$0xff] %v665_v26  }
 0x290   :  { %938 = shalt.err (!%p935_p2)
}
 0x291   :  { %s939_s14 = scalar_lea.hbm %s1123_s6, 256 }
 0x292   :  { %p940_p3 = scmp.ne.s32.totalorder %s1123_s6, %s939_s14  ;;  %p943_p4 = scmp.lt.u32.totalorder %s939_s14, %s1123_s6 }
 0x294   :  { %p945_p5 = pnand %p943_p4, %p940_p3 }
 0x296   :  { %948 = shalt.err (!%p945_p5)
}
 0x297   :  { %617 = dma.vmem_to_hbm [thread:$0]  %s612_s24, 256, %s1123_s6, [#allocation6], %s959_s9, %s959_s9, %s960_s10  }
 0x298   :  { %955 = dma.done.wait [#allocation6], 256  }
 0x299   :  { %956 = vsyncadd [#allocation6], 4294967040 }
 0x29a   :  { %621 = vsyncpa [#allocation5], 1 }
 0x29b   :  { %622 = vsyncpa [#allocation8], 1 }
 0x29c   :  { %623 = vsyncpa [#allocation11], 1 }
 0x29d   :  { %624 = vsyncpa [#allocation6], 1 }

</bundles_post_ra>
